<compile_context>
chip_gen: v6e
topology: v6e:2x2x1
jax: 0.10.0
libtpu: 0.0.40
codegen_flags: <defaults>
</compile_context>

<pallas_src>
import jax
import jax.numpy as jnp
from jax import lax
from jax.experimental import pallas as pl
from jax.experimental.pallas import tpu as pltpu

_LEAKY_SLOPE = 0.01   # nn.LeakyReLU() default
_BN_EPS = 1e-5        # nn.BatchNorm2d default
_KSIZE = 3            # Output(kernel_size=3) default


# ---------------------------------------------------------------------------
# Pallas kernel: 3x3 VALID conv over a pre-padded, channel-flattened input,
# fused with bias add and tanh.
#   x_ref : (1, H+2, (W+2)*C)   activated + padded input, row-flattened over (w, c)
#   w_ref : (3, (W+2)*C, W*Cout) block-Toeplitz weight, one slab per kernel row kh
#   b_ref : (1, W*Cout)          bias tiled over output columns
#   o_ref : (1, H, W*Cout)       lane-dense output
# out[h, w*Cout+co] = tanh(bias[co] + sum_kh (x_ref[0,kh:kh+H,:] @ w_ref[kh])[h, w*Cout+co])
# ---------------------------------------------------------------------------
def _conv_bias_tanh_kernel(x_ref, w_ref, b_ref, o_ref):
    _, H, N = o_ref.shape                      # N = W*Cout (lane dim, 128 in test cfg)
    acc = jnp.zeros((H, N), dtype=jnp.float32)
    for kh in range(_KSIZE):                   # 3 MXU pushes, K = (W+2)*C each
        acc += jnp.dot(x_ref[0, kh:kh + H, :], w_ref[kh],
                       preferred_element_type=jnp.float32)
    acc = acc + b_ref[...]
    o_ref[...] = jnp.tanh(acc).reshape(1, H, N).astype(o_ref.dtype)


# ---------------------------------------------------------------------------
# Wrapper-side glue
# ---------------------------------------------------------------------------
def _spectral_normalize(w_oihw, key, n_iter=1, eps=1e-12):
    """PyTorch-style spectral norm of a conv weight (power iteration on (Cout, -1))."""
    cout = w_oihw.shape[0]
    wm = w_oihw.reshape(cout, -1)
    u = jax.random.normal(key, (cout,), dtype=wm.dtype)
    u = u / (jnp.linalg.norm(u) + eps)
    v = wm.T @ u
    for _ in range(n_iter):
        v = wm.T @ u
        v = v / (jnp.linalg.norm(v) + eps)
        u = wm @ v
        u = u / (jnp.linalg.norm(u) + eps)
    sigma = u @ (wm @ v)
    return w_oihw / sigma


def _prepare_padded_nhwc(x_nchw, p, use_coord):
    """Fused pre-pass: BN(eval) + LeakyReLU + NHWC transpose + ReflectionPad(1)
    + optional AddCoords (applied to the padded tensor, as in the reference module)."""
    B, C, H, W = x_nchw.shape
    x = x_nchw.astype(jnp.float32)
    inv_std = lax.rsqrt(p["running_var"] + _BN_EPS)
    scale = (p["gamma"] * inv_std).reshape(1, C, 1, 1)
    shift = (p["beta"] - p["running_mean"] * p["gamma"] * inv_std).reshape(1, C, 1, 1)
    y = x * scale + shift
    y = jnp.where(y >= 0, y, _LEAKY_SLOPE * y)                    # LeakyReLU
    y = jnp.transpose(y, (0, 2, 3, 1))                            # NHWC
    y = jnp.pad(y, ((0, 0), (1, 1), (1, 1), (0, 0)), mode="reflect")
    if use_coord:
        Hp, Wp = H + 2, W + 2
        assert Hp == Wp, "AddCoords in the reference module requires square spatial dims"
        xx = (jnp.arange(Wp, dtype=jnp.float32) / (Hp - 1)) * 2.0 - 1.0   # varies over width
        yy = (jnp.arange(Hp, dtype=jnp.float32) / (Wp - 1)) * 2.0 - 1.0   # varies over height
        xx_c = jnp.broadcast_to(xx[None, None, :, None], (B, Hp, Wp, 1))
        yy_c = jnp.broadcast_to(yy[None, :, None, None], (B, Hp, Wp, 1))
        y = jnp.concatenate([y, xx_c, yy_c], axis=-1)
    return y                                                      # (B, H+2, W+2, Ct)


def _build_toeplitz_weight(w_oihw, W):
    """Build (KH, (W+2)*C, W*Cout) block-Toeplitz slabs so that the kw/channel
    contraction of the 3x3 conv becomes a single lane-dense matmul per kernel row."""
    Cout, C, KH, KW = w_oihw.shape
    Wp = W + KW - 1                                   # padded width (pad=1 each side)
    win = jnp.arange(Wp)[:, None]
    wout = jnp.arange(W)[None, :]
    kw = win - wout                                    # (Wp, W)
    valid = (kw >= 0) & (kw < KW)
    kw_c = jnp.clip(kw, 0, KW - 1)
    wt = w_oihw[:, :, :, kw_c]                         # (Cout, C, KH, Wp, W)
    wt = jnp.where(valid[None, None, None], wt, 0.0)
    wt = jnp.transpose(wt, (2, 3, 1, 4, 0))            # (KH, Wp, C, W, Cout)
    return wt.reshape(KH, Wp * C, W * Cout).astype(jnp.float32)


def output_forward(x_nchw, p, use_coord=False):
    """Output module forward.  x_nchw: (B, Cin, H, W) -> (B, Cout, H, W)."""
    xp = _prepare_padded_nhwc(x_nchw, p, use_coord)    # (B, Hp, Wp, Ct)
    B, Hp, Wp, Ct = xp.shape
    H, W = Hp - 2, Wp - 2
    Cout = p["bias"].shape[0]
    N = W * Cout

    x_flat = xp.reshape(B, Hp, Wp * Ct)                # (B, Hp, Wp*Ct)
    w_toe = _build_toeplitz_weight(p["w_sn"], W)       # (3, Wp*Ct, W*Cout)
    bias_row = jnp.tile(p["bias"].astype(jnp.float32), W).reshape(1, N)

    out_flat = pl.pallas_call(
        _conv_bias_tanh_kernel,
        out_shape=jax.ShapeDtypeStruct((B, H, N), x_nchw.dtype),
        grid_spec=pltpu.PrefetchScalarGridSpec(
            num_scalar_prefetch=0,
            grid=(B,),
            in_specs=[
                pl.BlockSpec((1, Hp, Wp * Ct), lambda b: (b, 0, 0)),
                pl.BlockSpec((_KSIZE, Wp * Ct, N), lambda b: (0, 0, 0)),
                pl.BlockSpec((1, N), lambda b: (0, 0)),
            ],
            out_specs=pl.BlockSpec((1, H, N), lambda b: (b, 0, 0)),
        ),
        compiler_params=pltpu.CompilerParams(
            dimension_semantics=("parallel",)),
    )(x_flat, w_toe, bias_row)

    out = out_flat.reshape(B, H, W, Cout)
    return jnp.transpose(out, (0, 3, 1, 2))            # back to NCHW


# ---------------------------------------------------------------------------
# Pure-JAX reference (same module semantics, conv via lax.conv) for correctness.
# ---------------------------------------------------------------------------
def _reference_output(x_nchw, p, use_coord=False):
    xp = _prepare_padded_nhwc(x_nchw, p, use_coord)
    w_hwio = jnp.transpose(p["w_sn"], (2, 3, 1, 0)).astype(jnp.float32)
    out = lax.conv_general_dilated(
        xp, w_hwio, window_strides=(1, 1), padding="VALID",
        dimension_numbers=("NHWC", "HWIO", "NHWC"))
    out = jnp.tanh(out + p["bias"].reshape(1, 1, 1, -1))
    return jnp.transpose(out.astype(x_nchw.dtype), (0, 3, 1, 2))


def _make_params(key, cin_conv, cin_bn, cout):
    ks = jax.random.split(key, 7)
    gamma = jax.random.normal(ks[0], (cin_bn,)) * 0.1 + 1.0
    beta = jax.random.normal(ks[1], (cin_bn,)) * 0.1
    running_mean = jax.random.normal(ks[2], (cin_bn,)) * 0.1
    running_var = jax.nn.softplus(jax.random.normal(ks[3], (cin_bn,))) + 0.5
    w = jax.random.normal(ks[4], (cout, cin_conv, _KSIZE, _KSIZE)) * 0.2
    w_sn = _spectral_normalize(w, ks[5])               # use_spect=True default
    bias = jax.random.normal(ks[6], (cout,)) * 0.1
    return dict(gamma=gamma, beta=beta, running_mean=running_mean,
                running_var=running_var, w_sn=w_sn, bias=bias)


if __name__ == "__main__":
    key = jax.random.PRNGKey(0)
    kx, kp0, kp1 = jax.random.split(key, 3)

    B, Cin, H, W = 2, 4, 16, 16
    Cout = 8                                            # W*Cout = 128 -> lane-dense output

    x = jax.random.normal(kx, (B, Cin, H, W), dtype=jnp.float32)

    # Default Output config: BatchNorm2d + LeakyReLU + ReflectionPad + SN-Conv + Tanh.
    p_plain = _make_params(kp0, Cin, Cin, Cout)
    out = jax.block_until_ready(output_forward(x, p_plain, use_coord=False))
    ref = jax.block_until_ready(_reference_output(x, p_plain, use_coord=False))
    assert out.shape == (B, Cout, H, W)
    assert jnp.allclose(out, ref, atol=1e-4, rtol=1e-4), \
        float(jnp.max(jnp.abs(out - ref)))

    # CoordConv branch (use_coord=True): xx/yy channels appended to the padded tensor.
    p_coord = _make_params(kp1, Cin + 2, Cin, Cout)
    out_c = jax.block_until_ready(output_forward(x, p_coord, use_coord=True))
    ref_c = jax.block_until_ready(_reference_output(x, p_coord, use_coord=True))
    assert out_c.shape == (B, Cout, H, W)
    assert jnp.allclose(out_c, ref_c, atol=1e-4, rtol=1e-4), \
        float(jnp.max(jnp.abs(out_c - ref_c)))

    print("KERNEL_OK")
</pallas_src>

<mosaic_0001>
module attributes {stable_mosaic.version = 11 : i64} {
  func.func @_conv_bias_tanh_kernel(%arg0: i32, %arg1: memref<1x18x72xf32, #tpu.memory_space<vmem>>, %arg2: memref<3x72x128xf32, #tpu.memory_space<vmem>>, %arg3: memref<1x128xf32, #tpu.memory_space<vmem>>, %arg4: memref<1x16x128xf32, #tpu.memory_space<vmem>>) attributes {dimension_semantics = [#tpu.dimension_semantics<parallel>], iteration_bounds = array<i64: 2>, scalar_prefetch = 0 : i64, scratch_operands = 0 : i64, tpu.core_type = #tpu.core_type<tc>, window_params = [{transform_indices = @transform_0, window_bounds = array<i64: 1, 18, 72>}, {pipeline_mode = #tpu.pipeline_mode<synchronous>, transform_indices = @transform_1, window_bounds = array<i64: 3, 72, 128>}, {pipeline_mode = #tpu.pipeline_mode<synchronous>, transform_indices = @transform_2, window_bounds = array<i64: 1, 128>}, {transform_indices = @transform_3, window_bounds = array<i64: 1, 16, 128>}]} {
    %cst = arith.constant 0.000000e+00 : f32
    %0 = vector.broadcast %cst : f32 to vector<16x128xf32>
    %c0 = arith.constant 0 : index
    %c0_0 = arith.constant 0 : index
    %c0_1 = arith.constant 0 : index
    %1 = vector.load %arg1[%c0, %c0_0, %c0_1] : memref<1x18x72xf32, #tpu.memory_space<vmem>>, vector<1x16x72xf32>
    %2 = vector.shape_cast %1 : vector<1x16x72xf32> to vector<16x72xf32>
    %c0_2 = arith.constant 0 : index
    %c0_3 = arith.constant 0 : index
    %c0_4 = arith.constant 0 : index
    %3 = vector.load %arg2[%c0_2, %c0_3, %c0_4] : memref<3x72x128xf32, #tpu.memory_space<vmem>>, vector<1x72x128xf32>
    %4 = vector.shape_cast %3 : vector<1x72x128xf32> to vector<72x128xf32>
    %cst_5 = arith.constant dense<0.000000e+00> : vector<16x128xf32>
    %5 = tpu.matmul %2, %4, %cst_5 {dimension_numbers = #tpu.dot_dimension_numbers<[1], [0], [0], [1], [0, 0, 1, 1], [], []>} : vector<16x72xf32>, vector<72x128xf32>, vector<16x128xf32> -> vector<16x128xf32>
    %6 = arith.addf %0, %5 : vector<16x128xf32>
    %c0_6 = arith.constant 0 : index
    %c1 = arith.constant 1 : index
    %c0_7 = arith.constant 0 : index
    %7 = vector.load %arg1[%c0_6, %c1, %c0_7] : memref<1x18x72xf32, #tpu.memory_space<vmem>>, vector<1x16x72xf32>
    %8 = vector.shape_cast %7 : vector<1x16x72xf32> to vector<16x72xf32>
    %c1_8 = arith.constant 1 : index
    %c0_9 = arith.constant 0 : index
    %c0_10 = arith.constant 0 : index
    %9 = vector.load %arg2[%c1_8, %c0_9, %c0_10] : memref<3x72x128xf32, #tpu.memory_space<vmem>>, vector<1x72x128xf32>
    %10 = vector.shape_cast %9 : vector<1x72x128xf32> to vector<72x128xf32>
    %cst_11 = arith.constant dense<0.000000e+00> : vector<16x128xf32>
    %11 = tpu.matmul %8, %10, %cst_11 {dimension_numbers = #tpu.dot_dimension_numbers<[1], [0], [0], [1], [0, 0, 1, 1], [], []>} : vector<16x72xf32>, vector<72x128xf32>, vector<16x128xf32> -> vector<16x128xf32>
    %12 = arith.addf %6, %11 : vector<16x128xf32>
    %c0_12 = arith.constant 0 : index
    %c2 = arith.constant 2 : index
    %c0_13 = arith.constant 0 : index
    %13 = vector.load %arg1[%c0_12, %c2, %c0_13] : memref<1x18x72xf32, #tpu.memory_space<vmem>>, vector<1x16x72xf32>
    %14 = vector.shape_cast %13 : vector<1x16x72xf32> to vector<16x72xf32>
    %c2_14 = arith.constant 2 : index
    %c0_15 = arith.constant 0 : index
    %c0_16 = arith.constant 0 : index
    %15 = vector.load %arg2[%c2_14, %c0_15, %c0_16] : memref<3x72x128xf32, #tpu.memory_space<vmem>>, vector<1x72x128xf32>
    %16 = vector.shape_cast %15 : vector<1x72x128xf32> to vector<72x128xf32>
    %cst_17 = arith.constant dense<0.000000e+00> : vector<16x128xf32>
    %17 = tpu.matmul %14, %16, %cst_17 {dimension_numbers = #tpu.dot_dimension_numbers<[1], [0], [0], [1], [0, 0, 1, 1], [], []>} : vector<16x72xf32>, vector<72x128xf32>, vector<16x128xf32> -> vector<16x128xf32>
    %18 = arith.addf %12, %17 : vector<16x128xf32>
    %c0_18 = arith.constant 0 : index
    %c0_19 = arith.constant 0 : index
    %19 = vector.load %arg3[%c0_18, %c0_19] : memref<1x128xf32, #tpu.memory_space<vmem>>, vector<1x128xf32>
    %20 = vector.broadcast %19 : vector<1x128xf32> to vector<16x128xf32>
    %21 = arith.addf %18, %20 : vector<16x128xf32>
    %22 = math.tanh %21 : vector<16x128xf32>
    %23 = vector.shape_cast %22 : vector<16x128xf32> to vector<1x16x128xf32>
    %c0_20 = arith.constant 0 : index
    %c0_21 = arith.constant 0 : index
    %c0_22 = arith.constant 0 : index
    %24 = vector.load %arg4[%c0_20, %c0_21, %c0_22] : memref<1x16x128xf32, #tpu.memory_space<vmem>>, vector<1x16x128xf32>
    tpu.vector_store %arg4[%c0_20, %c0_21, %c0_22], %23 {strides = array<i32>} : memref<1x16x128xf32, #tpu.memory_space<vmem>>, vector<1x16x128xf32>,
    return
  }
  func.func @transform_0(%arg0: i32) -> (i32, i32, i32) {
    %c0_i32 = arith.constant 0 : i32
    %c0_i32_0 = arith.constant 0 : i32
    %c0_i32_1 = arith.constant 0 : i32
    return %arg0, %c0_i32, %c0_i32_0 : i32, i32, i32
  }
  func.func @transform_1(%arg0: i32) -> (i32, i32, i32) {
    %c0_i32 = arith.constant 0 : i32
    %c0_i32_0 = arith.constant 0 : i32
    %c0_i32_1 = arith.constant 0 : i32
    %c0_i32_2 = arith.constant 0 : i32
    return %c0_i32, %c0_i32_0, %c0_i32_1 : i32, i32, i32
  }
  func.func @transform_2(%arg0: i32) -> (i32, i32) {
    %c0_i32 = arith.constant 0 : i32
    %c0_i32_0 = arith.constant 0 : i32
    %c0_i32_1 = arith.constant 0 : i32
    return %c0_i32, %c0_i32_0 : i32, i32
  }
  func.func @transform_3(%arg0: i32) -> (i32, i32, i32) {
    %c0_i32 = arith.constant 0 : i32
    %c0_i32_0 = arith.constant 0 : i32
    %c0_i32_1 = arith.constant 0 : i32
    return %arg0, %c0_i32, %c0_i32_0 : i32, i32, i32
  }
}

</mosaic_0001>

<bundles_post_ra>
// kernel: tpu_custom_call.1
= control target key start
LH: loop header
LB: loop body
LE: loop exit
PB: predicated region body
PF: predicated region fallthrough
CT: control target
= control target key end

     0   :  { %8 = vsyncpa [#allocation3], 0  ;;  %s999_s0 = inlined_call_operand.vmem [shape: f32[2,18,72], index: 0, kind: input, shape index: {}]   ;;  %s1000_s1 = inlined_call_operand.hbm [shape: f32[3,72,128], index: 1, kind: input, shape index: {}]   ;;  %s1001_s2 = inlined_call_operand.vmem [shape: f32[1,128], index: 2, kind: input, shape index: {}]   ;;  %s1002_s3 = inlined_call_operand.hbm [shape: f32[2,16,128], index: 3, kind: output, shape index: {}]  }
   0x1   :  { %9 = vsyncpa [#allocation4], 0 }
   0x2   :  { %11 = vsyncpa [#allocation4 + $0x1], 0  ;;  %s860_s12 = smov 0   ;;  %s862_s13 = smov 0  }
   0x3   :  { %s864_s14 = smov 0   ;;  %s866_s15 = smov 0  }
   0x4 LB: > { %s881_s16 = sadd.s32 4294967295, %s832_s15   ;;  %s566_s17 = sadd.s32 4294967294, %s832_s15   ;;  %s832_s15 = sphi %s866_s15, %s1010_s15   ;;  %s828_s14 = sphi %s864_s14, %s1009_s14   ;;  %s824_s13 = sphi %s862_s13, %s1008_s13   ;;  %s820_s12 = sphi %s860_s12, %s1007_s12  }
   0x5   : > { %s885_s18 = sadd.s32 1, %s832_s15   ;;  %s92_s19 = sadd.s32 1, %s828_s14 }
   0x6   : > { %s89_s20 = ssub.s32 %s832_s15, %s885_s18  ;;  %p102_p0 = scmp.ne.s32.totalorder %s828_s14, %s824_s13 }
   0x7   : > { %p90_p1 = scmp.eq.s32.totalorder %s89_s20, 0  ;;  %p103_p2 = scmp.eq.s32.totalorder %s881_s16, 1 }
   0x8   : > { %p108_p3 = scmp.ne.s32.totalorder %s824_s13, %s820_s12  ;;  %p109_p4 = scmp.eq.s32.totalorder %s566_s17, 1 }
   0x9   : > { %s896_s21 = scalar_select %p90_p1, %s828_s14, %s92_s19  }
   0xa   : > { %p898_p5 = por %p103_p2, %p102_p0  ;;  %p902_p6 = por %p109_p4, %p108_p3 }
   0xb   : > { %p567_p7 = scmp.ge.s32.totalorder %s832_s15, 1  ;;  %p116_p8 = scmp.lt.s32.totalorder %s832_s15, 3 }
   0xc   : > { %s1004_s23 = scalar_select %p902_p6, 1, 0 }
   0xd   : > { %p698_p9 = scmp.eq.s32.totalorder %s881_s16, 0  ;;  %p909_p10 = pnand %p567_p7, %p116_p8 }
   0xe   : > { %s834_s25 = smov [#allocation2]  }
   0xf   : > { %s128_s26 = sshll.u32 %s834_s25, 4  ;;  %p690_p11 = pneg %p909_p10  ;;  %s129_s26 = int_to_ptr.vmem [resolvable:$true] %s128_s26 }
  0x10   : > { %s753_s27 = scalar_lea.vmem %s129_s26, 3456  ;;  %p761_p3 = scmp.lt.s32.totalorder %s129_s26, %s129_s26 }
  0x11   : > { %p691_p12 = pnand %p698_p9, %p690_p11  ;;  %p754_p0 = scmp.ne.s32.totalorder %s129_s26, %s753_s27 }
  0x12   : > { %p762_p4 = scmp.lt.s32.totalorder %s753_s27, %s753_s27 }
  0x13   : > { %p744_p13 = pneg %p691_p12 }
  0x14   : > { %p763_p6 = por %p762_p4, %p761_p3 }
  0x15   : > { %p756_p1 = pnand %p754_p0, %p744_p13 }
  0x17   : > { %p757_p2 = pneg %p756_p1 }
  0x19   : > { %p764_p7 = pnand %p763_p6, %p757_p2 }
  0x1b   : > { %767 = shalt.err (!%p764_p7)
}
  0x1c   : > { %s835_s28 = smov 128   ;;  %s836_s29 = smov 8  }
  0x1d   : > { %693 = dma.hbm_to_vmem [thread:$0]  (!%p691_p12), %s1000_s1, 3456, %s129_s26, [#allocation3], %s835_s28, %s835_s28, %s836_s29  }
  0x1e   : > { %155 = sbr.rel (%p909_p10) target bundleno = 302 (0x12e), region = 32 }
  0x23   : > { %811 = dma.done.wait (%p698_p9), [#allocation3], 3456  }
  0x24   : > { %813 = vsyncadd (%p698_p9), [#allocation3], 4294963840  ;;  %v206_v0 = vld [vmem:[#allocation2 + $0x88] sm:$0xff]  ;;  %v194_v1 = vld [vmem:[#allocation2 + $0x40] sm:$0xff]  ;;  %p179_p6 = scmp.lt.s32.totalorder %s881_s16, 1  ;;  %vm207_vm0 = vcmask 588800  }
  0x25   : > { %v205_v2 = vld [vmem:[#allocation2 + $0x80] sm:$0xff]  ;;  %620 = vmatprep.subr.mxu0 %v206_v0  ;;  %641 = vmatprep.subr.mxu1 %v194_v1  ;;  %v193_v3 = vld [vmem:[#allocation2 + $0x38] sm:$0xff]  ;;  %v192_v5 = vld [vmem:[#allocation2 + $0x30] sm:$0xff]  ;;  %s176_s17 = sand.u32 1, %s824_s13   ;;  %s586_s20 = sshll.u32 %s881_s16, 8 }
  0x26   : > { %621 = vmatpush3.msra.mxu0 %v206_v0  ;;  %642 = vmatpush3.msra.mxu1 %v194_v1  ;;  %v204_v4 = vld [vmem:[#allocation2 + $0x78] sm:$0xff]  ;;  %v203_v6 = vld [vmem:[#allocation2 + $0x70] sm:$0xff]  ;;  %v191_v7 = vld [vmem:[#allocation2 + $0x28] sm:$0xff]  ;;  %s180_s5 = scalar_select %p179_p6, %s881_s16, 1 }
  0x27   : > { %622 = vmatprep.subr.mxu0 %v205_v2  ;;  %643 = vmatprep.subr.mxu1 %v193_v3  ;;  %v202_v8 = vld [vmem:[#allocation2 + $0x68] sm:$0xff]  ;;  %v190_v9 = vld [vmem:[#allocation2 + $0x20] sm:$0xff]  ;;  %v189_v11 = vld [vmem:[#allocation2 + $0x18] sm:$0xff]  ;;  %s572_s19 = sshll.u32 %s176_s17, 4  ;;  %s955_s28 = scalar_lea.hbm %s1002_s3, %s586_s20 }
  0x28   : > { %623 = vmatpush3.msra.mxu0 %v205_v2  ;;  %644 = vmatpush3.msra.mxu1 %v193_v3  ;;  %v201_v10 = vld [vmem:[#allocation2 + $0x60] sm:$0xff]  ;;  %s683_s6 = smul.u32 24, %s180_s5  ;;  %v200_v12 = vld [vmem:[#allocation2 + $0x58] sm:$0xff]  ;;  %v188_v13 = vld [vmem:[#allocation2 + $0x10] sm:$0xff]  ;;  %s178_s24 = scalar_lea.vmem [#allocation5], %s572_s19 }
  0x29   : > { %624 = vmatprep.subr.mxu0 %v204_v4  ;;  %645 = vmatprep.subr.mxu1 %v192_v5  ;;  %v199_v14 = vld [vmem:[#allocation2 + $0x50] sm:$0xff]  ;;  %v187_v15 = vld [vmem:[#allocation2 + $0x8] sm:$0xff]  ;;  %v186_v17 = vld [vmem:[#allocation2] sm:$0xff]  ;;  %s492_s25 = sshll.u32 %s178_s24, 4  ;;  %s959_s29 = scalar_lea.sflag [#allocation4], %s176_s17  ;;  %s957_s25 = int_to_ptr.vmem [resolvable:$true] %s492_s25 }
  0x2a   : > { %625 = vmatpush3.msra.mxu0 %v204_v4  ;;  %646 = vmatpush3.msra.mxu1 %v192_v5  ;;  %s933_s9 = scalar_lea.vmem %s999_s0, %s683_s6  ;;  %v198_v16 = vld [vmem:[#allocation2 + $0x48] sm:$0xff]  ;;  %v381_v22 = vld [vmem:[#allocation2 + $0xd0] sm:$0xff]  ;;  %v379_v25 = vld [vmem:[#allocation2 + $0xc0] sm:$0xff]  ;;  %s768_s30 = scalar_lea.vmem %s957_s25, 256 }
  0x2b   : > { %626 = vmatprep.subr.mxu0 %v203_v6  ;;  %647 = vmatprep.subr.mxu1 %v191_v7  ;;  %v195_v18 = vld [vmem:[%s933_s9 + $0x1] sm:$0xff]  ;;  %v196_v20 = vld [vmem:[%s933_s9 + $0x9] sm:$0xff]  ;;  %v378_v26 = vld [vmem:[#allocation2 + $0xb8] sm:$0xff]  ;;  %p769_p8 = scmp.ne.s32.totalorder %s957_s25, %s768_s30  ;;  %s837_s16 = smov [#allocation5]  }
  0x2c   : > { %627 = vmatpush3.msra.mxu0 %v203_v6  ;;  %648 = vmatpush3.msra.mxu1 %v191_v7  ;;  %v184_v19 = vld [vmem:[%s933_s9] sm:$0xff]  ;;  %v185_v21 = vld [vmem:[%s933_s9 + $0x8] sm:$0xff]  ;;  %v377_v27 = vld [vmem:[#allocation2 + $0xb0] sm:$0xff]  ;;  %s772_s4 = sshll.u32 %s837_s16, 4  ;;  %s773_s4 = int_to_ptr.vmem [resolvable:$false] %s772_s4 }
  0x2d   : > { %628 = vmatprep.subr.mxu0 %v202_v8  ;;  %649 = vmatprep.subr.mxu1 %v190_v9  ;;  %v370_v23 = vld [vmem:[%s933_s9 + $0x2] sm:$0xff]  ;;  %v374_v30 = vld [vmem:[#allocation2 + $0x98] sm:$0xff]  ;;  %v373_v31 = vld [vmem:[#allocation2 + $0x90] sm:$0xff]  ;;  %p770_p9 = pnand %p769_p8, %p898_p5  ;;  %s774_s5 = scalar_lea.vmem %s773_s4, 512 }
  0x2e   : > { %629 = vmatpush3.msra.mxu0 %v202_v8  ;;  %650 = vmatpush3.msra.mxu1 %v190_v9  ;;  %v380_v24 = vld [vmem:[#allocation2 + $0xc8] sm:$0xff]  ;;  %v375_v29 = vld [vmem:[#allocation2 + $0xa0] sm:$0xff]  ;;  %p775_p11 = scmp.lt.s32.totalorder %s957_s25, %s773_s4  ;;  %p776_p12 = scmp.lt.s32.totalorder %s774_s5, %s768_s30 }
  0x2f   : > { %630 = vmatprep.subr.mxu0 %v201_v10  ;;  %651 = vmatprep.subr.mxu1 %v189_v11  ;;  %v376_v28 = vld [vmem:[#allocation2 + $0xa8] sm:$0xff]  ;;  %v580_v39 = vld [vmem:[%s1001_s2] ss:$0 sm:$0xff]  ;;  %p771_p10 = pneg %p770_p9 }
  0x30   : > { %631 = vmatpush3.msra.mxu0 %v201_v10  ;;  %652 = vmatpush3.msra.mxu1 %v189_v11  ;;  %v371_v32 = vld [vmem:[%s933_s9 + $0xa] sm:$0xff]  ;;  %p777_p13 = por %p776_p12, %p775_p11 }
  0x31   : > { %632 = vmatprep.subr.mxu0 %v200_v12  ;;  %653 = vmatprep.subr.mxu1 %v188_v13 }
  0x32   : > { %633 = vmatpush3.msra.mxu0 %v200_v12  ;;  %654 = vmatpush3.msra.mxu1 %v188_v13  ;;  %p778_p0 = pnand %p777_p13, %p771_p10 }
  0x33   : > { %634 = vmatprep.subr.mxu0 %v199_v14  ;;  %655 = vmatprep.subr.mxu1 %v187_v15 }
  0x34   : > { %635 = vmatpush3.msra.mxu0 %v199_v14  ;;  %656 = vmatpush3.msra.mxu1 %v187_v15 }
  0x35   : > { %636 = vmatprep.subr.mxu0 %v198_v16  ;;  %657 = vmatprep.subr.mxu1 %v186_v17 }
  0x36   : > { %637 = vmatpush3.msra.mxu0 %v198_v16  ;;  %638 = vmatprep.mubr.msk.f32.mxu0 %vm207_vm0, %v195_v18 }
  0x37   : > { %658 = vmatpush3.msra.mxu1 %v186_v17  ;;  %659 = vmatprep.mubr.msk.f32.mxu1 %vm207_vm0, %v184_v19 }
  0x38   : > { %639 = vmatmul.mubr.msk.f32.vlgmr.msra.gmra.mxu0 %vm207_vm0, %v196_v20  ;;  %660 = vmatmul.mubr.msk.f32.vlgmr.msra.gmra.mxu1 %vm207_vm0, %v185_v21 }
  0x39   : > { %662 = vmatprep.subr.mxu0 %v381_v22  ;;  %680 = vmatprep.mubr.msk.f32.mxu0 %vm207_vm0, %v370_v23 }
  0x3a   : > { %663 = vmatpush3.msra.mxu0 %v381_v22 }
  0x3b   : > { %664 = vmatprep.subr.mxu0 %v380_v24 }
  0x3c   : > { %665 = vmatpush3.msra.mxu0 %v380_v24 }
  0x3d   : > { %666 = vmatprep.subr.mxu0 %v379_v25 }
  0x3e   : > { %667 = vmatpush3.msra.mxu0 %v379_v25 }
  0x3f   : > { %668 = vmatprep.subr.mxu0 %v378_v26 }
  0x40   : > { %669 = vmatpush3.msra.mxu0 %v378_v26 }
  0x41   : > { %670 = vmatprep.subr.mxu0 %v377_v27 }
  0x42   : > { %671 = vmatpush3.msra.mxu0 %v377_v27 }
  0x43   : > { %672 = vmatprep.subr.mxu0 %v376_v28 }
  0x44   : > { %673 = vmatpush3.msra.mxu0 %v376_v28 }
  0x45   : > { %674 = vmatprep.subr.mxu0 %v375_v29 }
  0x46   : > { %675 = vmatpush3.msra.mxu0 %v375_v29 }
  0x47   : > { %676 = vmatprep.subr.mxu0 %v374_v30 }
  0x48   : > { %677 = vmatpush3.msra.mxu0 %v374_v30 }
  0x49   : > { %678 = vmatprep.subr.mxu0 %v373_v31 }
  0x4a   : > { %679 = vmatpush3.msra.mxu0 %v373_v31 }
  0x4b   : > { %681 = vmatmul.mubr.msk.f32.vlgmr.msra.gmra.mxu0 %vm207_vm0, %v371_v32 }
  0xf8   : > { %v640_v33 = vpop.f32.mrf.mxu0  ;;  %v661_v34 = vpop.f32.mrf.mxu1 }
  0xf9   : > { %v367_v37 = vadd.f32 %v661_v34, %v640_v33 }
  0xfa   : > { %v280_v35 = vpop.f32.mrf.mxu0  ;;  %v361_v36 = vpop.f32.mrf.mxu1 }
  0xfb   : > { %v362_v40 = vadd.f32 %v361_v36, %v280_v35 }
 0x10b   : > { %v682_v38 = vpop.f32.mrf.mxu0 }
 0x10c   : > { %v464_v41 = vadd.f32 %v682_v38, %v367_v37 }
 0x10d   : > { %v454_v42 = vpop.f32.mrf.mxu0 }
 0x10e   : > { %v473_v43 = vadd.f32 %v580_v39, %v464_v41  ;;  %v463_v44 = vadd.f32 %v454_v42, %v362_v40 }
 0x110   : > { %738 = vtanh.f32 %v473_v43  ;;  %v472_v45 = vadd.f32 %v580_v39, %v463_v44 }
 0x112   : > { %740 = vtanh.f32 %v472_v45 }
 0x11d   : > { %v739_v46 = vpop.eup %738 }
 0x11e   : > { %477 = vst [vmem:[%s178_s24 + $0x8] sm:$0xff] %v739_v46 }
 0x11f   : > { %v741_v47 = vpop.eup %740 }
 0x120   : > { %476 = vst [vmem:[%s178_s24] sm:$0xff] %v741_v47 }
 0x121   : > { %781 = shalt.err (!%p778_p0)
}
 0x122   : > { %s782_s6 = scalar_lea.hbm %s955_s28, 256  ;;  %s786_s9 = scalar_lea.hbm %s1002_s3, 512 }
 0x123   : > { %p783_p1 = scmp.ne.s32.totalorder %s955_s28, %s782_s6  ;;  %p787_p4 = scmp.lt.s32.totalorder %s955_s28, %s1002_s3 }
 0x124   : > { %p788_p7 = scmp.lt.s32.totalorder %s786_s9, %s782_s6 }
 0x125   : > { %p784_p2 = pnand %p783_p1, %p898_p5 }
 0x126   : > { %p789_p6 = por %p788_p7, %p787_p4 }
 0x127   : > { %p785_p3 = pneg %p784_p2 }
 0x129   : > { %p790_p8 = pnand %p789_p6, %p785_p3 }
 0x12b   : > { %793 = shalt.err (!%p790_p8)
}
 0x12c   : > { %s838_s17 = smov 128   ;;  %s839_s19 = smov 8  }
 0x12d   : > { %688 = dma.vmem_to_hbm [thread:$0]  (%p898_p5), %s957_s25, 256, %s955_s28, %s959_s29, %s838_s17, %s838_s17, %s839_s19  }
 0x12e PF: > { %p700_p9 = scmp.ge.s32.totalorder %s832_s15, 2  ;;  %s507_s20 = sand.u32 1, %s820_s12  }
 0x12f   : > { %p1006_p10 = scmp.ne.s32.totalorder %s1004_s23, 0  ;;  %s508_s24 = scalar_lea.sflag [#allocation4], %s507_s20 }
 0x131   : > { %p695_p11 = pnand %p700_p9, %p1006_p10 }
 0x133   : > { %p696_p12 = pneg %p695_p11 }
 0x135   : > { %815 = dma.done.wait (%p696_p12), %s508_s24, 256  }
 0x136   : > { %817 = vsyncadd (%p696_p12), %s508_s24, 4294967040  ;;  %p14_p13 = scmp.ge.s32.totalorder %s885_s18, 4   ;;  %s1007_s12 = smov %s824_s13 }
 0x137   : > { %s1008_s13 = smov %s828_s14  ;;  %s1009_s14 = smov %s896_s21 }
 0x138   : > { %s1010_s15 = smov %s885_s18  ;;  %16 = sbr.rel (!%p14_p13) target bundleno = 4 (0x4), region = 74 }
 0x13d   :  { %513 = vsyncpa [#allocation3], 1 }
 0x13e   :  { %515 = vsyncpa [#allocation3 + $0x1], 1 }
 0x13f   :  { %516 = vsyncpa [#allocation4], 1 }
 0x140   :  { %518 = vsyncpa [#allocation4 + $0x1], 1 }

</bundles_post_ra>
